<compile_context>
chip_gen: v5e
topology: v5e:2x2
jax: 0.10.0
libtpu: 0.0.40
codegen_flags: <defaults>
</compile_context>

<pallas_src>
import functools

import numpy as np
import jax
import jax.numpy as jnp
from jax.experimental import pallas as pl
from jax.experimental.pallas import tpu as pltpu


def _round_up(x, m):
    return ((x + m - 1) // m) * m


# -----------------------------------------------------------------------------
# Pallas kernel 1: masked cross-entropy, per-pixel loss + valid flag
#   logits block: (C, TP)   (pixels on the lane axis)
#   target block: (1, TP) int32
#   outputs:      (1, TP) masked per-pixel loss, (1, TP) valid flag   (lane-dense)
# -----------------------------------------------------------------------------
def _ce_kernel(logits_ref, tgt_ref, loss_ref, valid_ref, *, ignore_index):
    x = logits_ref[...].astype(jnp.float32)                              # (C, TP)
    t = tgt_ref[...]                                                     # (1, TP)

    m = jnp.max(x, axis=0, keepdims=True)                                # (1, TP)
    lse = m + jnp.log(jnp.sum(jnp.exp(x - m), axis=0, keepdims=True))    # (1, TP)

    cls = jax.lax.broadcasted_iota(jnp.int32, x.shape, 0)                # (C, TP)
    tgt_logit = jnp.sum(jnp.where(cls == t, x, 0.0), axis=0, keepdims=True)

    valid = (t != ignore_index).astype(jnp.float32)                      # (1, TP)
    loss_ref[...] = (lse - tgt_logit) * valid
    valid_ref[...] = valid


def cross_entropy_loss(logits_nchw, target_nhw, ignore_index, max_tile=2048):
    """nn.CrossEntropyLoss(ignore_index=...) with mean reduction, no class weights."""
    N, C, H, W = logits_nchw.shape
    P = H * W
    x = logits_nchw.reshape(N, C, P)                 # free reshape, native dtype (no f32 upcast)
    t = target_nhw.reshape(N, 1, P).astype(jnp.int32)

    tile = min(max_tile, _round_up(P, 128))
    P_pad = _round_up(P, tile)
    if P_pad != P:
        x = jnp.pad(x, ((0, 0), (0, 0), (0, P_pad - P)))
        t = jnp.pad(t, ((0, 0), (0, 0), (0, P_pad - P)), constant_values=ignore_index)
    n_pt = P_pad // tile

    kernel = functools.partial(_ce_kernel, ignore_index=int(ignore_index))
    loss_px, valid_px = pl.pallas_call(
        kernel,
        out_shape=(jax.ShapeDtypeStruct((N, 1, P_pad), jnp.float32),
                   jax.ShapeDtypeStruct((N, 1, P_pad), jnp.float32)),
        grid=(N, n_pt),
        in_specs=[pl.BlockSpec((None, C, tile), lambda n, p: (n, 0, p)),
                  pl.BlockSpec((None, 1, tile), lambda n, p: (n, 0, p))],
        out_specs=(pl.BlockSpec((None, 1, tile), lambda n, p: (n, 0, p)),
                   pl.BlockSpec((None, 1, tile), lambda n, p: (n, 0, p))),
        compiler_params=pltpu.CompilerParams(
            dimension_semantics=("parallel", "parallel")),
    )(x, t)
    return jnp.sum(loss_px) / jnp.maximum(jnp.sum(valid_px), 1.0)


# -----------------------------------------------------------------------------
# Pallas kernel 2: supervised contrastive loss over sampled anchors
#   Row-block grid over anchors.  Per step:
#     f_all  : (Tp, Dp) bf16 resident contrast features
#     f_anc  : (RB, Dp) bf16 anchor block
#     dots   : (Tp, RB) f32  -> reductions over axis 0 -> lane-dense (1, RB) outputs
# -----------------------------------------------------------------------------
def _contrastive_kernel(f_all_ref, f_anc_ref, lab_col_ref, lab_row_ref,
                        v_col_ref, v_row_ref, loss_ref, cnt_ref, *,
                        inv_temperature, scale, rb):
    i = pl.program_id(0)

    f_all = f_all_ref[...]                    # (Tp, Dp)
    f_anc = f_anc_ref[...]                    # (RB, Dp)
    lab_j = lab_col_ref[...]                  # (Tp, 1)  label of contrast sample j
    lab_a = lab_row_ref[...]                  # (1, RB)  label of anchors in this block
    v_j = v_col_ref[...]                      # (Tp, 1)
    v_a = v_row_ref[...]                      # (1, RB)

    # dots[j, r] = <f_j, f_anchor_r> / temperature   (MXU, f32 accumulate)
    dots = jax.lax.dot_general(
        f_all, f_anc, (((1,), (1,)), ((), ())),
        preferred_element_type=jnp.float32) * inv_temperature            # (Tp, RB)

    logits_max = jnp.max(dots, axis=0, keepdims=True)                    # (1, RB)
    logits = dots - logits_max
    exp_logits = jnp.exp(logits)

    # fused masks: no materialized pos/neg/logits_mask trio
    eq = lab_j == lab_a                                                  # (Tp, RB)
    vv = v_j * v_a                                                       # (Tp, RB)
    Tp = f_all.shape[0]
    j_idx = jax.lax.broadcasted_iota(jnp.int32, (Tp, rb), 0)
    a_idx = jax.lax.broadcasted_iota(jnp.int32, (Tp, rb), 1) + i * rb
    not_diag = j_idx != a_idx

    pos_mask = jnp.where(eq & not_diag, vv, 0.0)                         # same-class, not self
    neg_w = jnp.where(eq, 0.0, vv)                                       # different-class, valid

    neg_sum = jnp.sum(exp_logits * neg_w, axis=0, keepdims=True)         # (1, RB)
    # floor the log argument: identical to reference whenever it is >= 1e-30,
    # avoids -inf when everything underflows (degenerate inputs)
    log_prob = logits - jnp.log(jnp.maximum(exp_logits + neg_sum, 1e-30))

    pos_cnt = jnp.sum(pos_mask, axis=0, keepdims=True)                   # (1, RB)
    pos_sum = jnp.sum(pos_mask * log_prob, axis=0, keepdims=True)        # (1, RB)

    inv_cnt = pl.reciprocal(jnp.maximum(pos_cnt, 1.0), approx=True)      # EUP, ~free
    mean_log_prob_pos = pos_sum * inv_cnt

    # rows that actually contribute to the mean: real (non-padded) anchors with >=1 positive
    contrib = jnp.where((v_a > 0.0) & (pos_cnt > 0.0), 1.0, 0.0)         # (1, RB)
    loss_ref[...] = (-scale) * mean_log_prob_pos * contrib
    cnt_ref[...] = contrib


def contrastive_loss_pallas(feats_, labels_, temperature, base_temperature,
                            row_block=128, use_bf16=True):
    """feats_: (A, V, D), labels_: (A,).  Mirrors PixelContrastLoss._contrastive."""
    feats_ = jnp.asarray(feats_, jnp.float32)
    labels_ = jnp.asarray(labels_, jnp.float32)
    A, V, D = feats_.shape
    T = A * V
    # torch.cat(torch.unbind(feats_, dim=1), dim=0) == view-major ordering
    contrast = jnp.transpose(feats_, (1, 0, 2)).reshape(T, D)
    labels_rep = jnp.tile(labels_, V)                                    # (T,)

    RB = row_block
    Tp = max(RB, _round_up(T, RB))            # multiple of 128 (lane / MXU friendly)
    Dp = max(128, _round_up(D, 128))

    fdt = jnp.bfloat16 if use_bf16 else jnp.float32
    feat_p = jnp.zeros((Tp, Dp), fdt).at[:T, :D].set(contrast.astype(fdt))
    lab_flat = jnp.full((Tp,), -1.0, jnp.float32).at[:T].set(labels_rep)
    valid_flat = jnp.zeros((Tp,), jnp.float32).at[:T].set(1.0)
    lab_col, lab_row = lab_flat.reshape(Tp, 1), lab_flat.reshape(1, Tp)
    valid_col, valid_row = valid_flat.reshape(Tp, 1), valid_flat.reshape(1, Tp)

    n_rb = Tp // RB
    kernel = functools.partial(_contrastive_kernel,
                               inv_temperature=1.0 / float(temperature),
                               scale=float(temperature) / float(base_temperature),
                               rb=RB)
    loss_rows, cnt_rows = pl.pallas_call(
        kernel,
        out_shape=(jax.ShapeDtypeStruct((1, Tp), jnp.float32),
                   jax.ShapeDtypeStruct((1, Tp), jnp.float32)),
        grid=(n_rb,),
        in_specs=[pl.BlockSpec((Tp, Dp), lambda i: (0, 0)),   # contrast features, resident
                  pl.BlockSpec((RB, Dp), lambda i: (i, 0)),   # anchor row block
                  pl.BlockSpec((Tp, 1), lambda i: (0, 0)),    # labels (contrast), resident
                  pl.BlockSpec((1, RB), lambda i: (0, i)),    # labels (anchor block)
                  pl.BlockSpec((Tp, 1), lambda i: (0, 0)),    # valid  (contrast), resident
                  pl.BlockSpec((1, RB), lambda i: (0, i))],   # valid  (anchor block)
        out_specs=(pl.BlockSpec((1, RB), lambda i: (0, i)),
                   pl.BlockSpec((1, RB), lambda i: (0, i))),
        compiler_params=pltpu.CompilerParams(dimension_semantics=("parallel",)),
    )(feat_p, feat_p, lab_col, lab_row, valid_col, valid_row)

    return jnp.sum(loss_rows) / jnp.maximum(jnp.sum(cnt_rows), 1.0)


# -----------------------------------------------------------------------------
# Glue: nearest-neighbor label resize (torch F.interpolate mode='nearest')
# -----------------------------------------------------------------------------
def resize_labels_nearest(labels_nhw, h, w):
    N, H, W = labels_nhw.shape
    rows = jnp.floor(jnp.arange(h) * (H / h)).astype(jnp.int32)
    cols = jnp.floor(jnp.arange(w) * (W / w)).astype(jnp.int32)
    return labels_nhw[:, rows][:, :, cols]


# -----------------------------------------------------------------------------
# Glue: data-dependent hard anchor sampling (host side, deterministic RNG)
# -----------------------------------------------------------------------------
def hard_anchor_sampling(X, y_hat, y, ignore_label, max_samples, max_views,
                         hard_ratio, rng):
    B, _, D = X.shape
    classes, total = [], 0
    for ii in range(B):
        this_y = y_hat[ii]
        cls_list = [int(c) for c in np.unique(this_y)
                    if int(c) != ignore_label and int((this_y == c).sum()) > max_views]
        classes.append(cls_list)
        total += len(cls_list)
    if total == 0:
        return None, None
    n_view = min(max_samples // total, max_views)

    X_ = np.zeros((total, n_view, D), np.float32)
    y_ = np.zeros((total,), np.float32)
    ptr = 0
    for ii in range(B):
        this_y_hat, this_y = y_hat[ii], y[ii]
        for cls_id in classes[ii]:
            hard = np.nonzero((this_y_hat == cls_id) & (this_y != cls_id))[0]
            easy = np.nonzero((this_y_hat == cls_id) & (this_y == cls_id))[0]
            num_hard, num_easy = len(hard), len(easy)
            num_hard_bd = int(hard_ratio * n_view)
            num_easy_bd = n_view - num_hard_bd
            if num_hard >= num_hard_bd and num_easy >= num_easy_bd:
                nhk, nek = num_hard_bd, n_view - num_hard_bd
            elif num_hard >= num_hard_bd:
                nek = num_easy
                nhk = n_view - nek
            elif num_easy >= num_easy_bd:
                nhk = num_hard
                nek = n_view - nhk
            else:
                raise RuntimeError("unreachable sampling branch")
            hard_sel = hard[rng.permutation(num_hard)[:nhk]]
            easy_sel = easy[rng.permutation(num_easy)[:nek]]
            idx = np.concatenate([hard_sel, easy_sel])
            X_[ptr] = X[ii, idx, :]
            y_[ptr] = cls_id
            ptr += 1
    return X_, y_


def pixel_contrast_loss(feats_nchw, labels_nhw, predict_nhw, cfg, rng):
    N, D, H, W = feats_nchw.shape
    labels_r = resize_labels_nearest(labels_nhw, H, W)
    labels_flat = np.asarray(labels_r).reshape(N, -1)
    feats_flat = np.asarray(jnp.transpose(feats_nchw, (0, 2, 3, 1))).reshape(N, -1, D)
    predict_flat = np.asarray(predict_nhw).reshape(N, -1)

    feats_, labels_ = hard_anchor_sampling(
        feats_flat, labels_flat, predict_flat,
        cfg["IGNORE"], cfg["max_samples"], cfg["max_views"],
        cfg.get("hard_ratio", 0.5), rng)
    if cfg.get("drop_one_class", False) and feats_ is not None \
            and len(np.unique(labels_)) < 2:
        feats_ = None
    if feats_ is None:
        return jnp.float32(0.0)
    return contrastive_loss_pallas(feats_, labels_, cfg["temperature"],
                                   cfg["base_temperature"])


# -----------------------------------------------------------------------------
# SCDCLCELoss forward (hard_mode=None, upsample=None)
# -----------------------------------------------------------------------------
def scdcl_ce_loss(feat_dict, logits_dict, target_seg1, target_seg2, target_cd, cfg):
    seg_cfg = cfg["SEG_LOSS"]

    ce1 = cross_entropy_loss(logits_dict["seg1_logits"], target_seg1, seg_cfg["IGNORE"])
    ce2 = cross_entropy_loss(logits_dict["seg2_logits"], target_seg2, seg_cfg["IGNORE"])
    ce_loss = (ce1 + ce2) / 2.0

    proj1, proj2 = feat_dict["proj1"], feat_dict["proj2"]
    # TODO(synk): bilinear (align_corners=True) upsample of proj / pred when cfg.upsample or hard_mode='pred' is set
    h_proj, w_proj = proj1.shape[2], proj1.shape[3]

    # hard_mode=None -> predictions are nearest-resized ground-truth labels
    predict1 = resize_labels_nearest(target_seg1, h_proj, w_proj)
    predict2 = resize_labels_nearest(target_seg2, h_proj, w_proj)

    rng = np.random.RandomState(0)
    lc1 = pixel_contrast_loss(proj1, target_seg1, predict1, seg_cfg, rng)
    lc2 = pixel_contrast_loss(proj2, target_seg2, predict2, seg_cfg, rng)
    loss_contrast_base = (lc1 + lc2) / 2.0

    proj = jnp.concatenate([proj1, proj2], axis=0)
    target_seg = jnp.concatenate([target_seg1, target_seg2], axis=0)
    predict = jnp.concatenate([predict1, predict2], axis=0)
    loss_contrast_crosst = pixel_contrast_loss(
        proj, target_seg, predict, seg_cfg["corsst_params"], rng)

    w0, w1 = seg_cfg["crosstbase2_weight"]
    loss_contrast = w0 * loss_contrast_base + w1 * loss_contrast_crosst
    return ce_loss + seg_cfg["loss_weight"] * loss_contrast


# -----------------------------------------------------------------------------
if __name__ == "__main__":
    cfg = {
        "SEG_LOSS": {
            "IGNORE": 255,
            "temperature": 0.1,
            "base_temperature": 0.07,
            "max_samples": 1024,
            "max_views": 8,
            "hard_ratio": 0.5,
            "loss_weight": 0.1,
            "hard_mode": None,
            "crosst_hard_mode": None,
            "upsample": None,
            "crosstbase2_weight": [1.0, 1.0],
            "corsst_params": {
                "IGNORE": 255,
                "temperature": 0.1,
                "base_temperature": 0.07,
                "max_samples": 1024,
                "max_views": 8,
                "hard_ratio": 0.5,
            },
        },
    }

    N, C_seg, C_cd, H, W = 2, 4, 2, 16, 16
    D_proj, Hp, Wp = 32, 8, 8

    key = jax.random.PRNGKey(0)
    ks = jax.random.split(key, 10)

    seg1_logits = jax.random.normal(ks[0], (N, C_seg, H, W), jnp.float32)
    seg2_logits = jax.random.normal(ks[1], (N, C_seg, H, W), jnp.float32)
    cd_logits = jax.random.normal(ks[2], (N, C_cd, H, W), jnp.float32)

    # projection embeddings are L2-normalized along channels, as produced by the
    # model's projection head (PixelContrastLoss assumes cosine-similarity inputs)
    proj1 = jax.random.normal(ks[3], (N, D_proj, Hp, Wp), jnp.float32)
    proj2 = jax.random.normal(ks[4], (N, D_proj, Hp, Wp), jnp.float32)
    proj1 = proj1 / (jnp.linalg.norm(proj1, axis=1, keepdims=True) + 1e-12)
    proj2 = proj2 / (jnp.linalg.norm(proj2, axis=1, keepdims=True) + 1e-12)

    target_seg1 = jax.random.randint(ks[5], (N, H, W), 0, C_seg).astype(jnp.int32)
    target_seg2 = jax.random.randint(ks[6], (N, H, W), 0, C_seg).astype(jnp.int32)
    target_cd = jax.random.randint(ks[7], (N, H, W), 0, 2).astype(jnp.int32)

    # sprinkle a few ignore pixels
    target_seg1 = jnp.where(jax.random.uniform(ks[8], (N, H, W)) < 0.05, 255, target_seg1)
    target_seg2 = jnp.where(jax.random.uniform(ks[9], (N, H, W)) < 0.05, 255, target_seg2)

    feat_dict = {"proj1": proj1, "proj2": proj2}
    logits_dict = {"cd_logits": cd_logits,
                   "seg1_logits": seg1_logits,
                   "seg2_logits": seg2_logits}

    loss = scdcl_ce_loss(feat_dict, logits_dict, target_seg1, target_seg2,
                         target_cd, cfg)
    jax.block_until_ready(loss)
    assert np.isfinite(float(loss)), f"non-finite loss: {float(loss)}"
    print("KERNEL_OK")
</pallas_src>

<mosaic_0001>
module attributes {stable_mosaic.version = 11 : i64} {
  func.func @_ce_kernel(%arg0: i32, %arg1: i32, %arg2: memref<1x4x256xf32, #tpu.memory_space<vmem>>, %arg3: memref<1x1x256xi32, #tpu.memory_space<vmem>>, %arg4: memref<1x1x256xf32, #tpu.memory_space<vmem>>, %arg5: memref<1x1x256xf32, #tpu.memory_space<vmem>>) attributes {dimension_semantics = [#tpu.dimension_semantics<parallel>, #tpu.dimension_semantics<parallel>], iteration_bounds = array<i64: 2, 1>, scalar_prefetch = 0 : i64, scratch_operands = 0 : i64, tpu.core_type = #tpu.core_type<tc>, window_params = [{transform_indices = @transform_0, window_bounds = array<i64: 1, 4, 256>}, {transform_indices = @transform_1, window_bounds = array<i64: 1, 1, 256>}, {transform_indices = @transform_2, window_bounds = array<i64: 1, 1, 256>}, {transform_indices = @transform_3, window_bounds = array<i64: 1, 1, 256>}]} {
    %c0 = arith.constant 0 : index
    %c0_0 = arith.constant 0 : index
    %c0_1 = arith.constant 0 : index
    %0 = vector.load %arg2[%c0, %c0_0, %c0_1] : memref<1x4x256xf32, #tpu.memory_space<vmem>>, vector<1x4x256xf32>
    %1 = vector.shape_cast %0 : vector<1x4x256xf32> to vector<4x256xf32>
    %c0_2 = arith.constant 0 : index
    %c0_3 = arith.constant 0 : index
    %c0_4 = arith.constant 0 : index
    %2 = vector.load %arg3[%c0_2, %c0_3, %c0_4] : memref<1x1x256xi32, #tpu.memory_space<vmem>>, vector<1x1x256xi32>
    %3 = vector.shape_cast %2 : vector<1x1x256xi32> to vector<1x256xi32>
    %cst = arith.constant dense<0xFF800000> : vector<256xf32>
    %4 = vector.multi_reduction <maximumf>, %1, %cst [0] : vector<4x256xf32> to vector<256xf32>
    %5 = vector.shape_cast %4 : vector<256xf32> to vector<1x256xf32>
    %6 = vector.broadcast %5 : vector<1x256xf32> to vector<4x256xf32>
    %7 = arith.subf %1, %6 : vector<4x256xf32>
    %8 = math.exp %7 : vector<4x256xf32>
    %cst_5 = arith.constant dense<0.000000e+00> : vector<256xf32>
    %9 = vector.multi_reduction <add>, %8, %cst_5 [0] : vector<4x256xf32> to vector<256xf32>
    %10 = vector.shape_cast %9 : vector<256xf32> to vector<1x256xf32>
    %11 = math.log %10 : vector<1x256xf32>
    %12 = arith.addf %5, %11 : vector<1x256xf32>
    %13 = tpu.iota {dimensions = array<i32: 0>} : vector<4x256xi32>
    %14 = vector.broadcast %3 : vector<1x256xi32> to vector<4x256xi32>
    %15 = arith.cmpi eq, %13, %14 : vector<4x256xi32>
    %cst_6 = arith.constant 0.000000e+00 : f32
    %16 = vector.broadcast %cst_6 : f32 to vector<4x256xf32>
    %17 = arith.select %15, %1, %16 : vector<4x256xi1>, vector<4x256xf32>
    %cst_7 = arith.constant dense<0.000000e+00> : vector<256xf32>
    %18 = vector.multi_reduction <add>, %17, %cst_7 [0] : vector<4x256xf32> to vector<256xf32>
    %19 = vector.shape_cast %18 : vector<256xf32> to vector<1x256xf32>
    %c255_i32 = arith.constant 255 : i32
    %20 = vector.broadcast %c255_i32 : i32 to vector<1x256xi32>
    %21 = arith.cmpi ne, %3, %20 : vector<1x256xi32>
    %22 = arith.extui %21 : vector<1x256xi1> to vector<1x256xi32>
    %23 = arith.sitofp %22 : vector<1x256xi32> to vector<1x256xf32>
    %24 = arith.subf %12, %19 : vector<1x256xf32>
    %25 = arith.mulf %24, %23 : vector<1x256xf32>
    %c0_8 = arith.constant 0 : index
    %c0_9 = arith.constant 0 : index
    %c0_10 = arith.constant 0 : index
    %26 = vector.load %arg4[%c0_8, %c0_9, %c0_10] : memref<1x1x256xf32, #tpu.memory_space<vmem>>, vector<1x1x256xf32>
    %27 = vector.shape_cast %26 : vector<1x1x256xf32> to vector<1x256xf32>
    %28 = vector.shape_cast %25 : vector<1x256xf32> to vector<1x1x256xf32>
    tpu.vector_store %arg4[%c0_8, %c0_9, %c0_10], %28 {strides = array<i32>} : memref<1x1x256xf32, #tpu.memory_space<vmem>>, vector<1x1x256xf32>,
    %c0_11 = arith.constant 0 : index
    %c0_12 = arith.constant 0 : index
    %c0_13 = arith.constant 0 : index
    %29 = vector.load %arg5[%c0_11, %c0_12, %c0_13] : memref<1x1x256xf32, #tpu.memory_space<vmem>>, vector<1x1x256xf32>
    %30 = vector.shape_cast %29 : vector<1x1x256xf32> to vector<1x256xf32>
    %31 = vector.shape_cast %23 : vector<1x256xf32> to vector<1x1x256xf32>
    tpu.vector_store %arg5[%c0_11, %c0_12, %c0_13], %31 {strides = array<i32>} : memref<1x1x256xf32, #tpu.memory_space<vmem>>, vector<1x1x256xf32>,
    return
  }
  func.func @transform_0(%arg0: i32, %arg1: i32) -> (i32, i32, i32) {
    %c0_i32 = arith.constant 0 : i32
    %c0_i32_0 = arith.constant 0 : i32
    return %arg0, %c0_i32, %arg1 : i32, i32, i32
  }
  func.func @transform_1(%arg0: i32, %arg1: i32) -> (i32, i32, i32) {
    %c0_i32 = arith.constant 0 : i32
    %c0_i32_0 = arith.constant 0 : i32
    return %arg0, %c0_i32, %arg1 : i32, i32, i32
  }
  func.func @transform_2(%arg0: i32, %arg1: i32) -> (i32, i32, i32) {
    %c0_i32 = arith.constant 0 : i32
    %c0_i32_0 = arith.constant 0 : i32
    return %arg0, %c0_i32, %arg1 : i32, i32, i32
  }
  func.func @transform_3(%arg0: i32, %arg1: i32) -> (i32, i32, i32) {
    %c0_i32 = arith.constant 0 : i32
    %c0_i32_0 = arith.constant 0 : i32
    return %arg0, %c0_i32, %arg1 : i32, i32, i32
  }
}

</mosaic_0001>

<bundles_post_ra>
// kernel: tpu_custom_call.1
= control target key start
LH: loop header
LB: loop body
LE: loop exit
PB: predicated region body
PF: predicated region fallthrough
CT: control target
= control target key end

     0   :  { %9 = vsyncpa [#allocation3], 0  ;;  %s1053_s0 = inlined_call_operand.hbm [shape: f32[2,4,256], index: 0, kind: input, shape index: {}]   ;;  %s1054_s1 = inlined_call_operand.hbm [shape: s32[2,1,256], index: 1, kind: input, shape index: {}]   ;;  %s1055_s2 = inlined_call_operand.hbm [shape: f32[2,1,256], index: 2, kind: output, shape index: {0}]   ;;  %s1056_s3 = inlined_call_operand.hbm [shape: f32[2,1,256], index: 3, kind: output, shape index: {1}]  }
   0x1   :  { %11 = vsyncpa [#allocation3 + $0x1], 0 }
   0x2   :  { %12 = vsyncpa [#allocation6], 0 }
   0x3   :  { %14 = vsyncpa [#allocation6 + $0x1], 0 }
   0x4   :  { %15 = vsyncpa [#allocation4], 0 }
   0x5   :  { %17 = vsyncpa [#allocation4 + $0x1], 0 }
   0x6   :  { %18 = vsyncpa [#allocation9], 0 }
   0x7   :  { %20 = vsyncpa [#allocation9 + $0x1], 0  ;;  %s859_s12 = smov 0   ;;  %s861_s13 = smov 0  }
   0x8   :  { %s863_s14 = smov 0   ;;  %s865_s15 = smov 0  }
   0x9   :  { %s867_s16 = smov 0   ;;  %s869_s17 = smov 0  }
   0xa LB: > { %s557_s18 = sadd.s32 4294967295, %s836_s17   ;;  %s558_s19 = sadd.s32 4294967294, %s836_s17   ;;  %s836_s17 = sphi %s869_s17, %s26_s17   ;;  %s832_s16 = sphi %s867_s16, %s1068_s16   ;;  %s828_s15 = sphi %s865_s15, %s1067_s15   ;;  %s824_s14 = sphi %s863_s14, %s1066_s14   ;;  %s820_s13 = sphi %s861_s13, %s1065_s13   ;;  %s816_s12 = sphi %s859_s12, %s1064_s12  }
   0xb   : > { %s38_s20 = sadd.s32 1, %s832_s16  ;;  %s47_s21 = sadd.s32 1, %s824_s14 }
   0xc   : > { %p40_p0 = scmp.ge.s32.totalorder %s38_s20, 2  ;;  %p54_p1 = scmp.ne.s32.totalorder %s824_s14, %s820_s13 }
   0xd   : > { %p55_p2 = scmp.eq.s32.totalorder %s836_s17, 0  ;;  %p60_p3 = scmp.ne.s32.totalorder %s820_s13, %s816_s12 }
   0xe   : > { %s1070_s20 = smov (%p40_p0, %s38_s20), 0  ;;  %p61_p5 = scmp.eq.s32.totalorder %s557_s18, 0 }
   0xf   : > { %p900_p4 = por %p55_p2, %p54_p1  ;;  %s42_s23 = ssub.s32 %s832_s16, %s1070_s20 }
  0x10   : > { %p114_p6 = scmp.eq.s32.totalorder %s557_s18, 1  ;;  %p45_p7 = scmp.eq.s32.totalorder %s42_s23, 0 }
  0x11   : > { %p906_p8 = por %p61_p5, %p60_p3  ;;  %p120_p10 = scmp.eq.s32.totalorder %s558_s19, 1 }
  0x12   : > { %p910_p9 = por %p114_p6, %p54_p1  ;;  %p560_p12 = scmp.ge.s32.totalorder %s836_s17, 2 }
  0x13   : > { %s915_s26 = scalar_select %p45_p7, %s824_s14, %s47_s21  }
  0x14   : > { %p917_p11 = por %p120_p10, %p60_p3  ;;  %p601_p13 = scmp.lt.s32.totalorder %s836_s17, 2 }
  0x15   : > { %s168_s28 = sand.u32 1, %s824_s14   ;;  %s578_s30 = sshll.u32 %s832_s16, 3 }
  0x16   : > { %s561_s29 = sshll.u32 %s168_s28, 3  ;;  %s179_s6 = scalar_lea.hbm %s1053_s0, %s578_s30 }
  0x17   : > { %s172_s7 = scalar_lea.vmem [#allocation2], %s561_s29  ;;  %s181_s9 = sshll.u32 %s179_s6, 4  ;;  %s182_s9 = int_to_ptr.hbm [resolvable:$true] %s181_s9 }
  0x18   : > { %s183_s8 = sshll.u32 %s172_s7, 4  ;;  %p930_p0 = pnand %p601_p13, %p900_p4  ;;  %s184_s8 = int_to_ptr.vmem [resolvable:$true] %s183_s8 }
  0x19   : > { %p566_p1 = scmp.ge.s32.totalorder %s836_s17, 1  ;;  %p209_p2 = scmp.lt.s32.totalorder %s836_s17, 3 }
  0x1a   : > { %s169_s11 = scalar_lea.sflag [#allocation3], %s168_s28  ;;  %s564_s18 = sshll.u32 %s168_s28, 1 }
  0x1b   : > { %590 = dma.hbm_to_vmem [thread:$0]  (!%p930_p0), %s182_s9, 128, %s184_s8, %s169_s11  }
  0x1c   : > { %p210_p3 = pnand %p566_p1, %p209_p2  ;;  %s565_s19 = sshll.u32 %s832_s16, 1 }
  0x1d   : > { %s200_s29 = scalar_lea.hbm %s1054_s1, %s565_s19  ;;  %s194_s30 = scalar_lea.vmem [#allocation5], %s564_s18 }
  0x1e   : > { %s204_s22 = sshll.u32 %s194_s30, 4  ;;  %s202_s4 = sshll.u32 %s200_s29, 4  ;;  %s205_s22 = int_to_ptr.vmem [resolvable:$true] %s204_s22  ;;  %s203_s4 = int_to_ptr.hbm [resolvable:$true] %s202_s4 }
  0x1f   : > { %s191_s5 = scalar_lea.sflag [#allocation6], %s168_s28  ;;  %213 = sbr.rel (%p210_p3) target bundleno = 119 (0x77), region = 28 }
  0x20   : > { %593 = dma.hbm_to_vmem [thread:$0]  (!%p930_p0), %s203_s4, 32, %s205_s22, %s191_s5  }
  0x21   : > { %s945_s6 = sand.u32 (!%p210_p3), 1, %s820_s13  }
  0x22   : > { %s567_s7 = sshll.u32 (!%p210_p3), %s945_s6, 3  ;;  %s216_s8 = scalar_lea.sflag (!%p210_p3), [#allocation3], %s945_s6 }
  0x23   : > { %s219_s9 = scalar_lea.vmem (!%p210_p3), [#allocation2], %s567_s7 }
  0x24   : > { %799 = dma.done.wait (%p906_p8), %s216_s8, 128  }
  0x25   : > { %801 = vsyncadd (%p906_p8), %s216_s8, 4294967168  ;;  %s954_s28 = sshll.u32 %s945_s6, 1  ;;  %s226_s10 = scalar_lea.sflag [#allocation6], %s945_s6 }
  0x26   : > { %s229_s11 = scalar_lea.vmem [#allocation5], %s954_s28 }
  0x27   : > { %803 = dma.done.wait (%p906_p8), %s226_s10, 32  }
  0x28   : > { %805 = vsyncadd (%p906_p8), %s226_s10, 4294967264  ;;  %v267_v0 = vld [vmem:[%s219_s9] sm:$0xff]  ;;  %vm275_vm0 = vcmask 1043456   ;;  %s574_s24 = sshll.u32 %s828_s15, 1  ;;  %v324_v22 = vlaneseq  ;;  %v268_v23 = vld [vmem:[%s229_s11] sm:$0x3] }
  0x29   : > { %270 = vst [vmem:[#allocation1] ss:$2 sm:$0xff] %v267_v0  ;;  %s409_s21 = scalar_lea.hbm %s1056_s3, %s574_s24  ;;  %s262_s23 = scalar_lea.vmem [#allocation8], %s954_s28  ;;  %vm351_vm1 = vcmp.ne.s32.totalorder %v268_v23, 255  ;;  %v838_v29 = vmov 0.0   ;;  %v326_v34 = vperm.slane %v268_v23, 0 }
  0x2a   : > { %s980_s29 = sshll.u32 %s262_s23, 4  ;;  %s413_s30 = sshll.u32 %s409_s21, 4  ;;  %v325_v24 = vshrl.u32 %v324_v22, 7  ;;  %v985_v30 = vsel %vm351_vm1, 1.0, %v838_v29  ;;  %vm987_vm2 = vcmp.lt.s32.totalorder %v324_v22, 256  ;;  %v327_v35 = vperm.slane %v268_v23, 1  ;;  %s412_s29 = int_to_ptr.vmem [resolvable:$true] %s980_s29  ;;  %s414_s30 = int_to_ptr.hbm [resolvable:$true] %s413_s30 }
  0x2b   : > { %374 = vst.msk [vmem:[%s262_s23] sm:$0x3] %vm987_vm2, %v985_v30  ;;  %s381_s22 = scalar_lea.sflag [#allocation9], %s945_s6  ;;  %s732_s4 = sshra.s32 %s414_s30, 4  ;;  %s733_s4 = int_to_ptr.hbm [resolvable:$true] %s732_s4 }
  0x2c   : > { %s734_s5 = scalar_lea.hbm %s733_s4, 2  ;;  %s738_s9 = scalar_lea.hbm %s1056_s3, 4 }
  0x2d   : > { %p735_p4 = scmp.ne.s32.totalorder %s733_s4, %s734_s5  ;;  %p739_p7 = scmp.lt.s32.totalorder %s733_s4, %s1056_s3 }
  0x2e   : > { %p740_p8 = scmp.lt.s32.totalorder %s738_s9, %s734_s5 }
  0x2f   : > { %p736_p5 = pnand %p735_p4, %p910_p9 }
  0x30   : > { %v271_v1 = vld.sshfl [vmem:[#allocation1] sm:$0xff pattern:$0x75316420]  ;;  %v272_v2 = vld.sshfl [vmem:[#allocation1 + $0x8] sm:$0xff pattern:$0x75316420]  ;;  %p741_p10 = por %p740_p8, %p739_p7 }
  0x31   : > { %v276_v3 = vsel %vm275_vm0, %v271_v1, -inf  ;;  %v283_v4 = vsel %vm275_vm0, %v272_v2, -inf  ;;  %p737_p6 = pneg %p736_p5 }
  0x32   : > { %v277_v5 = vrot.slane %v276_v3, 4  ;;  %v284_v6 = vrot.slane %v283_v4, 4 }
  0x33   : > { %p742_p13 = pnand %p741_p10, %p737_p6 }
  0x34   : > { %v278_v7 = vmax.f32 %v276_v3, %v277_v5  ;;  %v285_v8 = vmax.f32 %v283_v4, %v284_v6 }
  0x36   : > { %v279_v9 = vrot.slane %v278_v7, 2  ;;  %v286_v10 = vrot.slane %v285_v8, 2 }
  0x38   : > { %v280_v11 = vmax.f32 %v278_v7, %v279_v9  ;;  %v287_v12 = vmax.f32 %v285_v8, %v286_v10 }
  0x3a   : > { %v281_v13 = vrot.slane %v280_v11, 1  ;;  %v288_v14 = vrot.slane %v287_v12, 1 }
  0x3c   : > { %v964_v15 = vmax.f32 %v287_v12, %v288_v14  ;;  %v966_v16 = vmax.f32 %v280_v11, %v281_v13 }
  0x3e   : > { %v292_v17 = vrot.slane %v964_v15, 4 }
  0x40   : > { %v293_v18 = vsel %vm275_vm0, %v966_v16, %v292_v17 }
  0x41   : > { %v295_v19 = vsub.f32 %v267_v0, %v293_v18 }
  0x43   : > { %v296_v20 = vmul.f32 1.442695, %v295_v19 }
  0x45   : > { %652 = vpow2.f32 %v296_v20 }
  0x4b   : > { %v653_v21 = vpop.eup %652 }
  0x4c   : > { %299 = vst [vmem:[#allocation1] ss:$2 sm:$0xff] %v653_v21 }
  0x53   : > { %v300_v25 = vld.sshfl [vmem:[#allocation1] sm:$0xff pattern:$0x75316420]  ;;  %v301_v26 = vld.sshfl [vmem:[#allocation1 + $0x8] sm:$0xff pattern:$0x75316420] }
  0x54   : > { %v304_v27 = vsel %vm275_vm0, %v300_v25, 0.0  ;;  %v311_v28 = vsel %vm275_vm0, %v301_v26, 0.0  ;;  %330 = vst [vmem:[#allocation1] ss:$2 sm:$0xff] %v267_v0 }
  0x55   : > { %v305_v32 = vrot.slane %v304_v27, 4  ;;  %v312_v33 = vrot.slane %v311_v28, 4 }
  0x56   : > { %745 = shalt.err (!%p742_p13)
}
  0x57   : > { %584 = dma.vmem_to_hbm [thread:$0]  (%p910_p9), %s412_s29, 32, %s414_s30, %s381_s22   ;;  %v306_v36 = vadd.f32 %v305_v32, %v304_v27  ;;  %v313_v37 = vadd.f32 %v312_v33, %v311_v28  ;;  %vm328_vm3 = vcmp.eq.s32.totalorder %v325_v24, %v326_v34  ;;  %vm329_vm4 = vcmp.eq.s32.totalorder %v325_v24, %v327_v35 }
  0x58   : > { %v358_v6 = vperm.slane %v985_v30, 1  ;;  %s393_s21 = scalar_lea.hbm %s1055_s2, %s574_s24  ;;  %v357_v9 = vperm.slane %v985_v30, 0  ;;  %s255_s23 = scalar_lea.vmem [#allocation7], %s954_s28  ;;  %vm366_vm5 = vcmask 1040384  }
  0x59   : > { %v307_v38 = vrot.slane %v306_v36, 2  ;;  %v314_v39 = vrot.slane %v313_v37, 2  ;;  %s395_s29 = sshll.u32 %s255_s23, 4  ;;  %s397_s30 = sshll.u32 %s393_s21, 4  ;;  %s396_s29 = int_to_ptr.vmem [resolvable:$true] %s395_s29  ;;  %s398_s30 = int_to_ptr.hbm [resolvable:$true] %s397_s30 }
  0x5a   : > { %s376_s15 = scalar_lea.sflag [#allocation4], %s945_s6  ;;  %s760_s24 = sshra.s32 %s398_s30, 4  ;;  %s761_s24 = int_to_ptr.hbm [resolvable:$true] %s760_s24 }
  0x5b   : > { %v308_v40 = vadd.f32 %v307_v38, %v306_v36  ;;  %v315_v41 = vadd.f32 %v314_v39, %v313_v37  ;;  %v331_v42 = vld.sshfl [vmem:[#allocation1] sm:$0xff pattern:$0x75316420]  ;;  %v332_v43 = vld.sshfl [vmem:[#allocation1 + $0x8] sm:$0xff pattern:$0x75316420]  ;;  %p767_p3 = scmp.lt.s32.totalorder %s761_s24, %s1055_s2 }
  0x5c   : > { %v335_v44 = vsel %vm328_vm3, %v331_v42, 0.0  ;;  %v336_v45 = vsel %vm329_vm4, %v332_v43, 0.0  ;;  %s762_s22 = scalar_lea.hbm %s761_s24, 2  ;;  %s766_s5 = scalar_lea.hbm %s1055_s2, 4 }
  0x5d   : > { %v309_v46 = vrot.slane %v308_v40, 1  ;;  %v316_v47 = vrot.slane %v315_v41, 1  ;;  %v337_v48 = vsel %vm275_vm0, %v335_v44, 0.0  ;;  %v344_v49 = vsel %vm275_vm0, %v336_v45, 0.0  ;;  %p763_p0 = scmp.ne.s32.totalorder %s761_s24, %s762_s22  ;;  %p768_p4 = scmp.lt.s32.totalorder %s766_s5, %s762_s22 }
  0x5e   : > { %v338_v50 = vrot.slane %v337_v48, 4  ;;  %v345_v51 = vrot.slane %v344_v49, 4 }
  0x5f   : > { %v310_v52 = vadd.f32 %v309_v46, %v308_v40  ;;  %v317_v53 = vadd.f32 %v316_v47, %v315_v41  ;;  %p764_p1 = pnand %p763_p0, %p910_p9  ;;  %p769_p5 = por %p768_p4, %p767_p3 }
  0x60   : > { %v339_v54 = vadd.f32 %v338_v50, %v337_v48  ;;  %v346_v55 = vadd.f32 %v345_v51, %v344_v49 }
  0x61   : > { %654 = vlog2.f32 %v310_v52  ;;  %p765_p2 = pneg %p764_p1 }
  0x62   : > { %656 = vlog2.f32 %v317_v53  ;;  %v340_v56 = vrot.slane %v339_v54, 2  ;;  %v347_v57 = vrot.slane %v346_v55, 2 }
  0x63   : > { %p770_p6 = pnand %p769_p5, %p765_p2 }
  0x64   : > { %v341_v58 = vadd.f32 %v340_v56, %v339_v54  ;;  %v348_v59 = vadd.f32 %v347_v57, %v346_v55 }
  0x66   : > { %v342_v61 = vrot.slane %v341_v58, 1  ;;  %v349_v62 = vrot.slane %v348_v59, 1 }
  0x67   : > { %v655_v60 = vpop.eup %654 }
  0x68   : > { %v657_v63 = vpop.eup %656  ;;  %v319_v0 = vmul.f32 0.6931472, %v655_v60  ;;  %v343_v4 = vadd.f32 %v342_v61, %v341_v58  ;;  %v350_v5 = vadd.f32 %v349_v62, %v348_v59 }
  0x69   : > { %v321_v1 = vmul.f32 0.6931472, %v657_v63 }
  0x6a   : > { %v322_v2 = vadd.f32 %v319_v0, %v966_v16 }
  0x6b   : > { %v323_v3 = vadd.f32 %v321_v1, %v964_v15 }
  0x6c   : > { %v354_v7 = vsub.f32 %v322_v2, %v343_v4 }
  0x6d   : > { %v355_v8 = vsub.f32 %v323_v3, %v350_v5 }
  0x6e   : > { %v361_v11 = vmul.f32 %v357_v9, %v354_v7 }
  0x6f   : > { %v362_v10 = vmul.f32 %v358_v6, %v355_v8 }
  0x71   : > { %v365_v12 = vrot.slane %v362_v10, 7 }
  0x73   : > { %v367_v13 = vsel %vm366_vm5, %v361_v11, %v365_v12 }
  0x74   : > { %373 = vst.msk [vmem:[%s255_s23] sm:$0x3] %vm987_vm2, %v367_v13 }
  0x75   : > { %773 = shalt.err (!%p770_p6)
}
  0x76   : > { %583 = dma.vmem_to_hbm [thread:$0]  (%p910_p9), %s396_s29, 32, %s398_s30, %s376_s15  }
  0x77 PF: > { %s425_s6 = sand.u32 1, %s816_s12   ;;  %p595_p7 = pnand %p560_p12, %p917_p11 }
  0x78   : > { %s426_s9 = scalar_lea.sflag [#allocation4], %s425_s6 }
  0x79   : > { %p596_p8 = pneg %p595_p7 }
  0x7b   : > { %807 = dma.done.wait (%p596_p8), %s426_s9, 32  }
  0x7c   : > { %809 = vsyncadd (%p596_p8), %s426_s9, 4294967264  ;;  %s436_s10 = scalar_lea.sflag [#allocation9], %s425_s6 }
  0x7d   : > { %811 = dma.done.wait (%p596_p8), %s436_s10, 32  }
  0x7e   : > { %813 = vsyncadd (%p596_p8), %s436_s10, 4294967264  ;;  %s26_s17 = sadd.s32 1, %s836_s17   ;;  %s1064_s12 = smov %s820_s13 }
  0x7f   : > { %p23_p10 = scmp.ge.s32.totalorder %s26_s17, 4   ;;  %s1065_s13 = smov %s824_s14 }
  0x80   : > { %s1066_s14 = smov %s915_s26  ;;  %s1067_s15 = smov %s832_s16 }
  0x81   : > { %s1068_s16 = smov %s1070_s20  ;;  %25 = sbr.rel (!%p23_p10) target bundleno = 10 (0xa), region = 103 }
  0x86   :  { %442 = vsyncpa [#allocation3], 1 }
  0x87   :  { %444 = vsyncpa [#allocation3 + $0x1], 1 }
  0x88   :  { %445 = vsyncpa [#allocation6], 1 }
  0x89   :  { %447 = vsyncpa [#allocation6 + $0x1], 1 }
  0x8a   :  { %448 = vsyncpa [#allocation4], 1 }
  0x8b   :  { %450 = vsyncpa [#allocation4 + $0x1], 1 }
  0x8c   :  { %451 = vsyncpa [#allocation9], 1 }
  0x8d   :  { %453 = vsyncpa [#allocation9 + $0x1], 1 }

</bundles_post_ra>
